<compile_context>
chip_gen: v6e
topology: v6e:2x2x1
jax: 0.10.0
libtpu: 0.0.40
codegen_flags: <defaults>
</compile_context>

<pallas_src>
import functools

import jax
import jax.numpy as jnp
from jax.experimental import pallas as pl
from jax.experimental.pallas import tpu as pltpu


def gru_cell_kernel(x_ref, h_ref, wi3_ref, wh3_ref, bi3_ref, bhh_ref,
                    h_new_ref, *, hidden):
    x = x_ref[...]
    h = h_ref[...]

    # Two fused MXU matmuls: (B, in) @ (in, 3H) and (B, H) @ (H, 3H).
    gx = jnp.dot(x, wi3_ref[...], preferred_element_type=jnp.float32)
    gh = jnp.dot(h, wh3_ref[...], preferred_element_type=jnp.float32)

    bi3 = bi3_ref[...]

    # z, r gates: one sigmoid over the fused (B, 2H) slab.
    #   z = sigmoid(Wiz x + biz + Whz h + bhz)
    #   r = sigmoid(Wir x + bir + Whr h + bhr)
    zr = jax.nn.sigmoid(
        gx[:, : 2 * hidden] + gh[:, : 2 * hidden] + bi3[:, : 2 * hidden]
    )
    z = zr[:, :hidden]
    r = zr[:, hidden:]

    # Candidate: g = tanh(Wih x + bih + r * (Whh h + bhh))
    g = jnp.tanh(
        gx[:, 2 * hidden:] + bi3[:, 2 * hidden:]
        + r * (gh[:, 2 * hidden:] + bhh_ref[...])
    )

    # h_new = (1 - z) * g + z * h_prev
    h_new_ref[...] = ((1.0 - z) * g + z * h).astype(h_new_ref.dtype)


def prepare_params(params):
    """One-time prep: transpose + concatenate weights, combine biases.

    params: dict of W* (out, in) PyTorch-layout weights and b* (out,) biases.
    Returns fused operands ready to be fed to the kernel on every call.
    """
    hidden = params["Wiz_w"].shape[0]
    wi3 = jnp.concatenate(
        [params["Wiz_w"].T, params["Wir_w"].T, params["Wih_w"].T], axis=1
    )  # (input_size, 3H)
    wh3 = jnp.concatenate(
        [params["Whz_w"].T, params["Whr_w"].T, params["Whh_w"].T], axis=1
    )  # (hidden_size, 3H)
    bz = params["Wiz_b"] + params["Whz_b"]
    br = params["Wir_b"] + params["Whr_b"]
    bi3 = jnp.concatenate([bz, br, params["Wih_b"]]).reshape(1, 3 * hidden)
    bhh = params["Whh_b"].reshape(1, hidden)
    return {"wi3": wi3, "wh3": wh3, "bi3": bi3, "bhh": bhh}


@jax.jit
def gru_cell_forward(x, h_prev, fused):
    """Single GRU-cell step. `fused` comes from prepare_params()."""
    batch = x.shape[0]
    hidden = h_prev.shape[1]

    operands = (x, h_prev, fused["wi3"], fused["wh3"], fused["bi3"], fused["bhh"])

    # Small problem: everything fits comfortably in VMEM -> single-shot kernel
    # (no grid), full-array blocks resident in VMEM.
    in_specs = [pl.BlockSpec(memory_space=pltpu.MemorySpace.VMEM) for _ in operands]
    out_spec = pl.BlockSpec(memory_space=pltpu.MemorySpace.VMEM)

    kernel = functools.partial(gru_cell_kernel, hidden=hidden)

    return pl.pallas_call(
        kernel,
        out_shape=jax.ShapeDtypeStruct((batch, hidden), x.dtype),
        in_specs=in_specs,
        out_specs=out_spec,
    )(*operands)


def init_params(key, input_size, hidden_size):
    """Deterministic init mimicking nn.Linear's U(-1/sqrt(fan_in), 1/sqrt(fan_in))."""
    params = {}
    layer_defs = {
        "Wiz": input_size, "Wir": input_size, "Wih": input_size,
        "Whz": hidden_size, "Whr": hidden_size, "Whh": hidden_size,
    }
    keys = jax.random.split(key, 2 * len(layer_defs))
    for i, (name, fan_in) in enumerate(layer_defs.items()):
        bound = 1.0 / (fan_in ** 0.5)
        params[f"{name}_w"] = jax.random.uniform(
            keys[2 * i], (hidden_size, fan_in), jnp.float32, -bound, bound)
        params[f"{name}_b"] = jax.random.uniform(
            keys[2 * i + 1], (hidden_size,), jnp.float32, -bound, bound)
    return params


def gru_cell_reference(x, h_prev, params):
    """Pure-JAX reference matching the PyTorch forward exactly."""
    def lin(name, v):
        return v @ params[f"{name}_w"].T + params[f"{name}_b"]
    z = jax.nn.sigmoid(lin("Wiz", x) + lin("Whz", h_prev))
    r = jax.nn.sigmoid(lin("Wir", x) + lin("Whr", h_prev))
    g = jnp.tanh(lin("Wih", x) + r * lin("Whh", h_prev))
    return (1.0 - z) * g + z * h_prev


if __name__ == "__main__":
    batch, input_size, hidden_size = 8, 32, 32

    key = jax.random.PRNGKey(0)
    k_params, k_x, k_h = jax.random.split(key, 3)

    params = init_params(k_params, input_size, hidden_size)
    x = jax.random.normal(k_x, (batch, input_size), jnp.float32)
    h_prev = jax.random.normal(k_h, (batch, hidden_size), jnp.float32)

    # One-time weight prep (hoisted out of the per-call path).
    fused = jax.tree_util.tree_map(jax.block_until_ready, prepare_params(params))

    h_new = gru_cell_forward(x, h_prev, fused)
    h_new = jax.block_until_ready(h_new)

    h_ref = gru_cell_reference(x, h_prev, params)
    assert h_new.shape == (batch, hidden_size)
    assert jnp.allclose(h_new, h_ref, atol=1e-5, rtol=1e-5), "mismatch vs reference"

    print("KERNEL_OK")
</pallas_src>

<mosaic_0001>
module attributes {stable_mosaic.version = 11 : i64} {
  func.func @gru_cell_kernel(%arg0: memref<8x32xf32, #tpu.memory_space<vmem>>, %arg1: memref<8x32xf32, #tpu.memory_space<vmem>>, %arg2: memref<32x96xf32, #tpu.memory_space<vmem>>, %arg3: memref<32x96xf32, #tpu.memory_space<vmem>>, %arg4: memref<1x96xf32, #tpu.memory_space<vmem>>, %arg5: memref<1x32xf32, #tpu.memory_space<vmem>>, %arg6: memref<8x32xf32, #tpu.memory_space<vmem>>) attributes {dimension_semantics = [], scalar_prefetch = 0 : i64, scratch_operands = 0 : i64, tpu.core_type = #tpu.core_type<tc>} {
    %c0 = arith.constant 0 : index
    %c0_0 = arith.constant 0 : index
    %0 = vector.load %arg0[%c0, %c0_0] : memref<8x32xf32, #tpu.memory_space<vmem>>, vector<8x32xf32>
    %c0_1 = arith.constant 0 : index
    %c0_2 = arith.constant 0 : index
    %1 = vector.load %arg1[%c0_1, %c0_2] : memref<8x32xf32, #tpu.memory_space<vmem>>, vector<8x32xf32>
    %c0_3 = arith.constant 0 : index
    %c0_4 = arith.constant 0 : index
    %2 = vector.load %arg2[%c0_3, %c0_4] : memref<32x96xf32, #tpu.memory_space<vmem>>, vector<32x96xf32>
    %cst = arith.constant dense<0.000000e+00> : vector<8x96xf32>
    %3 = tpu.matmul %0, %2, %cst {dimension_numbers = #tpu.dot_dimension_numbers<[1], [0], [0], [1], [0, 0, 1, 1], [], []>} : vector<8x32xf32>, vector<32x96xf32>, vector<8x96xf32> -> vector<8x96xf32>
    %c0_5 = arith.constant 0 : index
    %c0_6 = arith.constant 0 : index
    %4 = vector.load %arg3[%c0_5, %c0_6] : memref<32x96xf32, #tpu.memory_space<vmem>>, vector<32x96xf32>
    %cst_7 = arith.constant dense<0.000000e+00> : vector<8x96xf32>
    %5 = tpu.matmul %1, %4, %cst_7 {dimension_numbers = #tpu.dot_dimension_numbers<[1], [0], [0], [1], [0, 0, 1, 1], [], []>} : vector<8x32xf32>, vector<32x96xf32>, vector<8x96xf32> -> vector<8x96xf32>
    %c0_8 = arith.constant 0 : index
    %c0_9 = arith.constant 0 : index
    %6 = vector.load %arg4[%c0_8, %c0_9] : memref<1x96xf32, #tpu.memory_space<vmem>>, vector<1x96xf32>
    %7 = vector.extract_strided_slice %3 {offsets = [0, 0], sizes = [8, 64], strides = [1, 1]} : vector<8x96xf32> to vector<8x64xf32>
    %8 = vector.extract_strided_slice %5 {offsets = [0, 0], sizes = [8, 64], strides = [1, 1]} : vector<8x96xf32> to vector<8x64xf32>
    %9 = arith.addf %7, %8 : vector<8x64xf32>
    %10 = vector.extract_strided_slice %6 {offsets = [0, 0], sizes = [1, 64], strides = [1, 1]} : vector<1x96xf32> to vector<1x64xf32>
    %11 = vector.broadcast %10 : vector<1x64xf32> to vector<8x64xf32>
    %12 = arith.addf %9, %11 : vector<8x64xf32>
    %13 = arith.negf %12 : vector<8x64xf32>
    %14 = math.exp %13 : vector<8x64xf32>
    %cst_10 = arith.constant 1.000000e+00 : f32
    %15 = vector.broadcast %cst_10 : f32 to vector<8x64xf32>
    %16 = arith.addf %15, %14 : vector<8x64xf32>
    %17 = arith.divf %15, %16 : vector<8x64xf32>
    %18 = vector.extract_strided_slice %17 {offsets = [0, 0], sizes = [8, 32], strides = [1, 1]} : vector<8x64xf32> to vector<8x32xf32>
    %19 = vector.extract_strided_slice %17 {offsets = [0, 32], sizes = [8, 32], strides = [1, 1]} : vector<8x64xf32> to vector<8x32xf32>
    %20 = vector.extract_strided_slice %3 {offsets = [0, 64], sizes = [8, 32], strides = [1, 1]} : vector<8x96xf32> to vector<8x32xf32>
    %21 = vector.extract_strided_slice %6 {offsets = [0, 64], sizes = [1, 32], strides = [1, 1]} : vector<1x96xf32> to vector<1x32xf32>
    %22 = vector.broadcast %21 : vector<1x32xf32> to vector<8x32xf32>
    %23 = arith.addf %20, %22 : vector<8x32xf32>
    %24 = vector.extract_strided_slice %5 {offsets = [0, 64], sizes = [8, 32], strides = [1, 1]} : vector<8x96xf32> to vector<8x32xf32>
    %c0_11 = arith.constant 0 : index
    %c0_12 = arith.constant 0 : index
    %25 = vector.load %arg5[%c0_11, %c0_12] : memref<1x32xf32, #tpu.memory_space<vmem>>, vector<1x32xf32>
    %26 = vector.broadcast %25 : vector<1x32xf32> to vector<8x32xf32>
    %27 = arith.addf %24, %26 : vector<8x32xf32>
    %28 = arith.mulf %19, %27 : vector<8x32xf32>
    %29 = arith.addf %23, %28 : vector<8x32xf32>
    %30 = math.tanh %29 : vector<8x32xf32>
    %cst_13 = arith.constant 1.000000e+00 : f32
    %31 = vector.broadcast %cst_13 : f32 to vector<8x32xf32>
    %32 = arith.subf %31, %18 : vector<8x32xf32>
    %33 = arith.mulf %32, %30 : vector<8x32xf32>
    %34 = arith.mulf %18, %1 : vector<8x32xf32>
    %35 = arith.addf %33, %34 : vector<8x32xf32>
    %c0_14 = arith.constant 0 : index
    %c0_15 = arith.constant 0 : index
    %36 = vector.load %arg6[%c0_14, %c0_15] : memref<8x32xf32, #tpu.memory_space<vmem>>, vector<8x32xf32>
    tpu.vector_store %arg6[%c0_14, %c0_15], %35 {strides = array<i32>} : memref<8x32xf32, #tpu.memory_space<vmem>>, vector<8x32xf32>,
    return
  }
}

</mosaic_0001>

<bundles_post_ra>
// kernel: gru_cell_forward.1
= control target key start
LH: loop header
LB: loop body
LE: loop exit
PB: predicated region body
PF: predicated region fallthrough
CT: control target
= control target key end

     0   :  { %11 = vsyncpa [#allocation3], 0  ;;  %s529_s0 = inlined_call_operand.hbm [shape: f32[8,32], index: 0, kind: input, shape index: {}]   ;;  %s530_s1 = inlined_call_operand.hbm [shape: f32[8,32], index: 1, kind: input, shape index: {}]   ;;  %s531_s2 = inlined_call_operand.hbm [shape: f32[32,96], index: 2, kind: input, shape index: {}]   ;;  %s532_s3 = inlined_call_operand.hbm [shape: f32[32,96], index: 3, kind: input, shape index: {}]   ;;  %s533_s4 = inlined_call_operand.vmem [shape: f32[1,96], index: 4, kind: input, shape index: {}]   ;;  %s534_s5 = inlined_call_operand.vmem [shape: f32[1,32], index: 5, kind: input, shape index: {}]   ;;  %s535_s6 = inlined_call_operand.hbm [shape: f32[8,32], index: 6, kind: output, shape index: {}]  }
   0x1   :  { %12 = vsyncpa [#allocation6], 0 }
   0x2   :  { %13 = vsyncpa [#allocation9], 0 }
   0x3   :  { %14 = vsyncpa [#allocation4], 0  ;;  %s458_s21 = smov [#allocation5]   ;;  %s459_s23 = smov [#allocation2]  }
   0x4   :  { %s31_s22 = sshll.u32 %s458_s21, 4  ;;  %s21_s24 = sshll.u32 %s459_s23, 4  ;;  %s32_s22 = int_to_ptr.vmem [resolvable:$true] %s31_s22  ;;  %s22_s24 = int_to_ptr.vmem [resolvable:$true] %s21_s24 }
   0x5   :  { %s358_s25 = scalar_lea.vmem %s32_s22, 128  ;;  %p363_p1 = scmp.lt.s32.totalorder %s32_s22, %s32_s22 }
   0x6   :  { %p359_p0 = scmp.ne.s32.totalorder %s32_s22, %s358_s25  ;;  %p364_p2 = scmp.lt.s32.totalorder %s358_s25, %s358_s25 }
   0x8   :  { %p365_p3 = por %p364_p2, %p363_p1 }
   0xa   :  { %p366_p4 = pnand %p365_p3, %p359_p0 }
   0xc   :  { %369 = shalt.err (!%p366_p4)
}
   0xd   :  { %34 = dma.hbm_to_vmem [thread:$0]  %s530_s1, 128, %s32_s22, [#allocation6]  }
   0xe   :  { %s378_s28 = scalar_lea.vmem %s22_s24, 128  ;;  %p383_p6 = scmp.lt.s32.totalorder %s22_s24, %s22_s24 }
   0xf   :  { %p379_p5 = scmp.ne.s32.totalorder %s22_s24, %s378_s28  ;;  %p384_p7 = scmp.lt.s32.totalorder %s378_s28, %s378_s28 }
  0x11   :  { %p385_p8 = por %p384_p7, %p383_p6 }
  0x13   :  { %p386_p9 = pnand %p385_p8, %p379_p5 }
  0x15   :  { %389 = shalt.err (!%p386_p9)
}
  0x16   :  { %24 = dma.hbm_to_vmem [thread:$0]  %s529_s0, 128, %s22_s24, [#allocation3]  }
  0x17   :  { %s460_s7 = smov [#allocation7]  }
  0x18   :  { %s40_s8 = sshll.u32 %s460_s7, 4  ;;  %s41_s8 = int_to_ptr.vmem [resolvable:$true] %s40_s8 }
  0x19   :  { %s398_s9 = scalar_lea.vmem %s41_s8, 512  ;;  %p403_p11 = scmp.lt.s32.totalorder %s41_s8, %s41_s8 }
  0x1a   :  { %p399_p10 = scmp.ne.s32.totalorder %s41_s8, %s398_s9  ;;  %p404_p12 = scmp.lt.s32.totalorder %s398_s9, %s398_s9 }
  0x1c   :  { %p405_p13 = por %p404_p12, %p403_p11 }
  0x1e   :  { %p406_p0 = pnand %p405_p13, %p399_p10 }
  0x20   :  { %409 = shalt.err (!%p406_p0)
}
  0x21   :  { %s461_s1 = smov 128   ;;  %s462_s10 = smov 8  }
  0x22   :  { %46 = dma.hbm_to_vmem [thread:$0]  %s531_s2, 512, %s41_s8, [#allocation6], %s461_s1, %s461_s1, %s462_s10  }
  0x23   :  { %s463_s13 = smov [#allocation8]  }
  0x24   :  { %s52_s14 = sshll.u32 %s463_s13, 4  ;;  %s53_s14 = int_to_ptr.vmem [resolvable:$true] %s52_s14 }
  0x25   :  { %s418_s0 = scalar_lea.vmem %s53_s14, 512  ;;  %p423_p2 = scmp.lt.s32.totalorder %s53_s14, %s53_s14 }
  0x26   :  { %p419_p1 = scmp.ne.s32.totalorder %s53_s14, %s418_s0  ;;  %p424_p3 = scmp.lt.s32.totalorder %s418_s0, %s418_s0 }
  0x28   :  { %p425_p4 = por %p424_p3, %p423_p2 }
  0x2a   :  { %p426_p5 = pnand %p425_p4, %p419_p1 }
  0x2c   :  { %429 = shalt.err (!%p426_p5)
}
  0x2d   :  { %58 = dma.hbm_to_vmem [thread:$0]  %s532_s3, 512, %s53_s14, [#allocation9], %s461_s1, %s461_s1, %s462_s10  }
  0x2e   :  { %450 = dma.done.wait [#allocation3], 128  }
  0x2f   :  { %451 = vsyncadd [#allocation3], 4294967168 }
  0x30   :  { %452 = dma.done.wait [#allocation6], 640  }
  0x31   :  { %453 = vsyncadd [#allocation6], 4294966656 }
  0x32   :  { %454 = dma.done.wait [#allocation9], 512  }
  0x33   :  { %455 = vsyncadd [#allocation9], 4294966784  ;;  %v464_v0 = vmov 0.0   ;;  %vm465_vm0 = vmmov 0   ;;  %v80_v1 = vld [vmem:[#allocation7 + $0x18] sm:$0xff]  ;;  %v79_v3 = vld [vmem:[#allocation7 + $0x10] sm:$0xff] }
  0x34   :  { %310 = vmatprep.subr.mxu0 %v464_v0  ;;  %321 = vmatprep.subr.mxu1 %v464_v0  ;;  %v158_v2 = vld [vmem:[#allocation8 + $0x18] sm:$0xff]  ;;  %v157_v4 = vld [vmem:[#allocation8 + $0x10] sm:$0xff]  ;;  %v78_v5 = vld [vmem:[#allocation7 + $0x8] sm:$0xff]  ;;  %vm81_vm1 = vcmask 261120   ;;  %s466_s17 = smov 64   ;;  %s468_s20 = smov 32  }
  0x35   :  { %318 = vmatprep.mubr.msk.f32.mxu0 %vm465_vm0, %v464_v0  ;;  %329 = vmatprep.mubr.msk.f32.mxu1 %vm465_vm0, %v464_v0  ;;  %v156_v6 = vld [vmem:[#allocation8 + $0x8] sm:$0xff]  ;;  %v77_v7 = vld [vmem:[#allocation7] sm:$0xff]  ;;  %v75_v9 = vld [vmem:[#allocation2] sm:$0xff] }
  0x36   :  { %311 = vmatpush3.msra.mxu0 %v80_v1  ;;  %322 = vmatpush3.msra.mxu1 %v158_v2  ;;  %v155_v8 = vld [vmem:[#allocation8] sm:$0xff]  ;;  %v76_v10 = vld [vmem:[#allocation5] sm:$0xff]  ;;  %v299_v11 = vld [vmem:[%s534_s5] ss:$0 sm:$0xff]  ;;  %s467_s5 = smov 96  }
  0x37   :  { %312 = vmatprep.subr.mxu0 %v464_v0  ;;  %323 = vmatprep.subr.mxu1 %v464_v0  ;;  %v297_v14 = vld [vmem:[%s533_s4] ss:$0 sm:$0xff]  ;;  %s469_s4 = smov [#allocation10]  }
  0x38   :  { %313 = vmatpush3.msra.mxu0 %v79_v3  ;;  %324 = vmatpush3.msra.mxu1 %v157_v4  ;;  %s284_s21 = sshll.u32 %s469_s4, 4  ;;  %s285_s21 = int_to_ptr.vmem [resolvable:$true] %s284_s21 }
  0x39   :  { %314 = vmatprep.subr.mxu0 %v464_v0  ;;  %325 = vmatprep.subr.mxu1 %v464_v0  ;;  %s430_s22 = scalar_lea.vmem %s285_s21, 128  ;;  %p435_p7 = scmp.lt.s32.totalorder %s285_s21, %s285_s21 }
  0x3a   :  { %315 = vmatpush3.msra.mxu0 %v78_v5  ;;  %326 = vmatpush3.msra.mxu1 %v156_v6  ;;  %p431_p6 = scmp.ne.s32.totalorder %s285_s21, %s430_s22  ;;  %p436_p8 = scmp.lt.s32.totalorder %s430_s22, %s430_s22 }
  0x3b   :  { %316 = vmatprep.subr.mxu0 %v464_v0  ;;  %327 = vmatprep.subr.mxu1 %v464_v0 }
  0x3c   :  { %317 = vmatpush3.msra.mxu0 %v77_v7  ;;  %328 = vmatpush3.msra.mxu1 %v155_v8  ;;  %p437_p9 = por %p436_p8, %p435_p7 }
  0x3d   :  { %319 = vmatmul.mubr.msk.f32.vlgmr.msra.gmra.mxu0 %vm81_vm1, %v75_v9  ;;  %330 = vmatmul.mubr.msk.f32.vlgmr.msra.gmra.mxu1 %vm81_vm1, %v76_v10 }
  0x3e   :  { %254 = vrot.lane.b32.xlu0 %v299_v11, %s466_s17  ;;  %p438_p10 = pnand %p437_p9, %p431_p6 }
  0xb0   :  { %v255_v12 = vpop.permute.xlu0 %254 }
  0xfd   :  { %v151_v13 = vpop.f32.mrf.mxu0  ;;  %v228_v15 = vpop.f32.mrf.mxu1 }
  0xfe   :  { %v247_v16 = vadd.f32 %v297_v14, %v151_v13  ;;  %v233_v17 = vadd.f32 %v228_v15, %v151_v13  ;;  %v257_v18 = vadd.f32 %v255_v12, %v228_v15 }
  0xff   :  { %v331_v19 = vpop.f32.mrf.mxu1  ;;  %v320_v20 = vpop.f32.mrf.mxu0 }
 0x100   :  { %259 = vrot.lane.b32.xlu0 %v257_v18, %s467_s5  ;;  %v240_v21 = vadd.f32 %v297_v14, %v233_v17 }
 0x102   :  { %v298_v22 = vmul.f32 -1.442695, %v240_v21 }
 0x104   :  { %344 = vpow2.f32 %v298_v22 }
 0x111   :  { %v345_v23 = vpop.eup %344 }
 0x112   :  { %v244_v24 = vadd.f32 1.0, %v345_v23 }
 0x114   :  { %346 = vrcp.f32 %v244_v24 }
 0x121   :  { %v347_v25 = vpop.eup %346 }
 0x122   :  { %v269_v31 = vsub.f32 1.0, %v347_v25  ;;  %v275_v33 = vmul.f32 %v347_v25, %v76_v10 }
 0x172   :  { %v260_v26 = vpop.permute.xlu0 %259 }
 0x173   :  { %v262_v27 = vmul.f32 %v347_v25, %v260_v26 }
 0x175   :  { %264 = vrot.lane.b32.xlu1 %v262_v27, %s468_s20 }
 0x1e7   :  { %v265_v28 = vpop.permute.xlu1 %264 }
 0x1e8   :  { %v267_v29 = vadd.f32 %v265_v28, %v247_v16 }
 0x1ea   :  { %348 = vtanh.f32 %v267_v29 }
 0x1f7   :  { %v349_v30 = vpop.eup %348 }
 0x1f8   :  { %271 = vrot.lane.b32.xlu1 %v349_v30, %s466_s17 }
 0x26a   :  { %v272_v32 = vpop.permute.xlu1 %271 }
 0x26b   :  { %v274_v34 = vmul.f32 %v272_v32, %v269_v31 }
 0x26d   :  { %v276_v35 = vadd.f32 %v275_v33, %v274_v34 }
 0x26f   :  { %277 = vst.msk [vmem:[#allocation10] sm:$0xff] %vm81_vm1, %v276_v35 }
 0x270   :  { %441 = shalt.err (!%p438_p10)
}
 0x271   :  { %287 = dma.vmem_to_hbm [thread:$0]  %s285_s21, 128, %s535_s6, [#allocation4]  }
 0x272   :  { %456 = dma.done.wait [#allocation4], 128  }
 0x273   :  { %457 = vsyncadd [#allocation4], 4294967168 }
 0x274   :  { %291 = vsyncpa [#allocation3], 1 }
 0x275   :  { %292 = vsyncpa [#allocation6], 1 }
 0x276   :  { %293 = vsyncpa [#allocation9], 1 }
 0x277   :  { %294 = vsyncpa [#allocation4], 1 }

</bundles_post_ra>
